<compile_context>
chip_gen: v7x
topology: tpu7x:2x2x1
jax: 0.10.0
libtpu: 0.0.40
codegen_flags: <defaults>
</compile_context>

<pallas_src>
import functools

import jax
import jax.numpy as jnp
from jax.experimental import pallas as pl
from jax.experimental.pallas import tpu as pltpu

HIDDEN = 128      # hidden_size in the PyTorch module
HEAD_PAD = 128    # lane-dense padded width of the fused output head


def _fuse_l2_default():
    """Block-diagonal layer-2 fusion only pays off on 256x256-MXU chips (v6e/v7x)."""
    try:
        kind = jax.devices()[0].device_kind.lower()
    except Exception:
        return False
    return ("v6" in kind) or ("v7" in kind)


def _make_kernel(num_inputs, fuse_l2):
    H = HIDDEN
    bf16 = jnp.bfloat16
    f32 = jnp.float32

    def layer1(x_ref, w1_ref, b1_ref):
        # K = num_inputs is tiny (4 for CartPole): a handful of broadcast-FMAs on
        # the VPU beats a nearly-empty MXU pass at the head of the serial chain.
        x = x_ref[...]                                     # [B, ni]  f32
        w1 = w1_ref[...]                                   # [ni, 2H] f32
        h = jnp.broadcast_to(b1_ref[...], (x.shape[0], w1.shape[1]))
        for k in range(num_inputs):
            h = h + x[:, k:k + 1] * w1[k:k + 1, :]
        return h                                           # [B, 2H] f32

    if fuse_l2:
        # v6e / v7x: one block-diagonal 256x256 layer-2 matmul, lane-masked activations.
        def kernel(x_ref, w1_ref, b1_ref, w2_hbm, b2_ref, wh_hbm, bh_ref,
                   out_ref, w2_vmem, wh_vmem, sem):
            # Start layer-2 / head weight DMAs so they overlap layer-1 compute.
            cp_w2 = pltpu.make_async_copy(w2_hbm, w2_vmem, sem.at[0])
            cp_wh = pltpu.make_async_copy(wh_hbm, wh_vmem, sem.at[1])
            cp_w2.start()
            cp_wh.start()

            h1 = layer1(x_ref, w1_ref, b1_ref)                       # [B, 2H]
            col = jax.lax.broadcasted_iota(jnp.int32, h1.shape, 1)
            is_critic = col < H
            tc = jnp.tanh(h1)
            h1a = jnp.where(is_critic, tc * tc, jnp.exp(-(h1 * h1)))

            cp_w2.wait()
            h2 = jnp.dot(h1a.astype(bf16), w2_vmem[...],
                         preferred_element_type=f32) + b2_ref[...]   # [B, 2H]
            h2a = jnp.where(is_critic, jnp.maximum(h2, 0.0), jnp.exp(-(h2 * h2)))

            cp_wh.wait()
            head = jnp.dot(h2a.astype(bf16), wh_vmem[...],
                           preferred_element_type=f32) + bh_ref[...]  # [B, 128]
            hcol = jax.lax.broadcasted_iota(jnp.int32, head.shape, 1)
            # tanh only on policy columns (>= 1); column 0 is the raw value.
            out_ref[...] = jnp.where(hcol >= 1, jnp.tanh(head), head)

    else:
        # v5e (128x128 MXU): keep two separate 128x128 layer-2 matmuls; head is two
        # accumulated dots (no lane-axis concat).
        def kernel(x_ref, w1_ref, b1_ref, cw2_hbm, cb2_ref, aw2_hbm, ab2_ref,
                   wh_hbm, bh_ref, out_ref, cw2_vmem, aw2_vmem, wh_vmem, sem):
            cp_c = pltpu.make_async_copy(cw2_hbm, cw2_vmem, sem.at[0])
            cp_a = pltpu.make_async_copy(aw2_hbm, aw2_vmem, sem.at[1])
            cp_h = pltpu.make_async_copy(wh_hbm, wh_vmem, sem.at[2])
            cp_c.start()
            cp_a.start()
            cp_h.start()

            h1 = layer1(x_ref, w1_ref, b1_ref)                       # [B, 2H]
            hc = h1[:, :H]
            ha = h1[:, H:]
            hc = jnp.tanh(hc)
            hc = hc * hc                                             # Sqr(tanh)
            ha = jnp.exp(-(ha * ha))                                 # Exp()

            cp_c.wait()
            hc = jnp.dot(hc.astype(bf16), cw2_vmem[...],
                         preferred_element_type=f32) + cb2_ref[...]
            hc = jnp.maximum(hc, 0.0)                                # ReLU

            cp_a.wait()
            ha = jnp.dot(ha.astype(bf16), aw2_vmem[...],
                         preferred_element_type=f32) + ab2_ref[...]
            ha = jnp.exp(-(ha * ha))                                 # Exp()

            cp_h.wait()
            head = (jnp.dot(hc.astype(bf16), wh_vmem[:H, :],
                            preferred_element_type=f32)
                    + jnp.dot(ha.astype(bf16), wh_vmem[H:, :],
                              preferred_element_type=f32)
                    + bh_ref[...])                                   # [B, 128]
            hcol = jax.lax.broadcasted_iota(jnp.int32, head.shape, 1)
            out_ref[...] = jnp.where(hcol >= 1, jnp.tanh(head), head)

    return kernel


def _full_spec(shape):
    """Full-array block in VMEM for a zero-dim grid."""
    zeros = (0,) * len(shape)
    return pl.BlockSpec(shape, lambda zeros=zeros: zeros)


def actor_critic_forward(x, packed, num_outputs, fuse_l2):
    """x: [B, num_inputs] float32. packed: dict from pack_params()."""
    B, ni = x.shape
    H = HIDDEN
    bf16 = jnp.bfloat16
    kernel = _make_kernel(ni, fuse_l2)

    if fuse_l2:
        args = (x, packed["w1"], packed["b1"], packed["w2"], packed["b2"],
                packed["wh"], packed["bh"])
        in_specs = [
            _full_spec(x.shape),
            _full_spec(packed["w1"].shape),
            _full_spec(packed["b1"].shape),
            pl.BlockSpec(memory_space=pl.ANY),     # w2 block-diag, DMA'd manually
            _full_spec(packed["b2"].shape),
            pl.BlockSpec(memory_space=pl.ANY),     # wh fused head, DMA'd manually
            _full_spec(packed["bh"].shape),
        ]
        scratch = [
            pltpu.VMEM((2 * H, 2 * H), bf16),
            pltpu.VMEM((2 * H, HEAD_PAD), bf16),
            pltpu.SemaphoreType.DMA((2,)),
        ]
    else:
        args = (x, packed["w1"], packed["b1"], packed["cw2"], packed["cb2"],
                packed["aw2"], packed["ab2"], packed["wh"], packed["bh"])
        in_specs = [
            _full_spec(x.shape),
            _full_spec(packed["w1"].shape),
            _full_spec(packed["b1"].shape),
            pl.BlockSpec(memory_space=pl.ANY),     # critic l2 weight
            _full_spec(packed["cb2"].shape),
            pl.BlockSpec(memory_space=pl.ANY),     # actor l2 weight
            _full_spec(packed["ab2"].shape),
            pl.BlockSpec(memory_space=pl.ANY),     # fused head weight
            _full_spec(packed["bh"].shape),
        ]
        scratch = [
            pltpu.VMEM((H, H), bf16),
            pltpu.VMEM((H, H), bf16),
            pltpu.VMEM((2 * H, HEAD_PAD), bf16),
            pltpu.SemaphoreType.DMA((3,)),
        ]

    out = pl.pallas_call(
        kernel,
        out_shape=jax.ShapeDtypeStruct((B, HEAD_PAD), jnp.float32),
        grid=(),
        in_specs=in_specs,
        out_specs=pl.BlockSpec((B, HEAD_PAD), lambda: (0, 0)),
        scratch_shapes=scratch,
    )(*args)

    value = out[:, 0:1]
    policy = out[:, 1:1 + num_outputs]
    return policy, value


def init_params(key, num_inputs, num_outputs, hidden_size):
    """PyTorch nn.Linear-style init (U[-1/sqrt(fan_in), ...]); stored [in, out], f32."""
    def linear(k, fan_in, fan_out):
        kw, kb = jax.random.split(k)
        bound = 1.0 / jnp.sqrt(fan_in)
        w = jax.random.uniform(kw, (fan_in, fan_out), jnp.float32, -bound, bound)
        b = jax.random.uniform(kb, (1, fan_out), jnp.float32, -bound, bound)
        return w, b

    keys = jax.random.split(key, 6)
    cw1, cb1 = linear(keys[0], num_inputs, hidden_size)
    cw2, cb2 = linear(keys[1], hidden_size, hidden_size)
    cw3, cb3 = linear(keys[2], hidden_size, 1)
    aw1, ab1 = linear(keys[3], num_inputs, hidden_size)
    aw2, ab2 = linear(keys[4], hidden_size, hidden_size)
    aw3, ab3 = linear(keys[5], hidden_size, num_outputs)
    return dict(cw1=cw1, cb1=cb1, cw2=cw2, cb2=cb2, cw3=cw3, cb3=cb3,
                aw1=aw1, ab1=ab1, aw2=aw2, ab2=ab2, aw3=aw3, ab3=ab3)


def pack_params(p, num_outputs, fuse_l2):
    """Build the fused/packed weights consumed by the kernel (done once, reused)."""
    H = HIDDEN
    bf16 = jnp.bfloat16
    f32 = jnp.float32
    assert 1 + num_outputs <= HEAD_PAD

    # Fused layer 1 [ni, 2H] = [critic | actor]; kept f32 (tiny, consumed on VPU).
    w1 = jnp.concatenate([p["cw1"], p["aw1"]], axis=1).astype(f32)
    b1 = jnp.concatenate([p["cb1"], p["ab1"]], axis=1).astype(f32)

    # Fused head: block-structured, zero-padded to a lane-dense 128-wide output.
    # NOTE: columns >= 1+num_outputs must stay exactly zero (sliced away by wrapper).
    wh = jnp.zeros((2 * H, HEAD_PAD), f32)
    wh = wh.at[:H, 0:1].set(p["cw3"])                 # critic rows -> value column
    wh = wh.at[H:, 1:1 + num_outputs].set(p["aw3"])   # actor rows  -> policy columns
    wh = wh.astype(bf16)
    bh = jnp.zeros((1, HEAD_PAD), f32)
    bh = bh.at[:, 0:1].set(p["cb3"])
    bh = bh.at[:, 1:1 + num_outputs].set(p["ab3"])

    packed = dict(w1=w1, b1=b1, wh=wh, bh=bh)
    if fuse_l2:
        # Block-diagonal layer 2: one 256x256 MXU pass on v6e/v7x.
        w2 = jnp.zeros((2 * H, 2 * H), f32)
        w2 = w2.at[:H, :H].set(p["cw2"])
        w2 = w2.at[H:, H:].set(p["aw2"])
        packed["w2"] = w2.astype(bf16)
        packed["b2"] = jnp.concatenate([p["cb2"], p["ab2"]], axis=1).astype(f32)
    else:
        packed["cw2"] = p["cw2"].astype(bf16)
        packed["aw2"] = p["aw2"].astype(bf16)
        packed["cb2"] = p["cb2"].astype(f32)
        packed["ab2"] = p["ab2"].astype(f32)
    return packed


def reference_forward(x, p, match_kernel_precision=True):
    """Pure-JAX reference of the PyTorch module.

    match_kernel_precision=True mirrors the kernel's mixed precision (f32 layer 1,
    bf16 weights/activations into the layer-2 and head dots, f32 accumulation).
    """
    f32 = jnp.float32
    bf16 = jnp.bfloat16
    hi = jax.lax.Precision.HIGHEST

    if match_kernel_precision:
        def dot2(a, w):
            return jnp.dot(a.astype(bf16), w.astype(bf16), preferred_element_type=f32)
    else:
        def dot2(a, w):
            return jnp.dot(a, w, precision=hi)

    h = jnp.tanh(jnp.dot(x, p["cw1"], precision=hi) + p["cb1"]) ** 2
    h = jnp.maximum(dot2(h, p["cw2"]) + p["cb2"], 0.0)
    value = dot2(h, p["cw3"]) + p["cb3"]

    a = jnp.exp(-(jnp.dot(x, p["aw1"], precision=hi) + p["ab1"]) ** 2)
    a = jnp.exp(-(dot2(a, p["aw2"]) + p["ab2"]) ** 2)
    policy = jnp.tanh(dot2(a, p["aw3"]) + p["ab3"])
    return policy, value


if __name__ == "__main__":
    num_inputs = 4     # CartPole observation dim
    num_outputs = 2    # CartPole action dim
    batch = 8          # sublane-aligned small batch (scale B up to amortize launch cost)

    fuse_l2 = _fuse_l2_default()

    key = jax.random.PRNGKey(0)
    k_params, k_x = jax.random.split(key)
    params = init_params(k_params, num_inputs, num_outputs, HIDDEN)
    packed = pack_params(params, num_outputs, fuse_l2)
    x = jax.random.normal(k_x, (batch, num_inputs), jnp.float32)

    fwd = jax.jit(functools.partial(actor_critic_forward,
                                    num_outputs=num_outputs, fuse_l2=fuse_l2))
    policy, value = fwd(x, packed)
    policy, value = jax.block_until_ready((policy, value))

    assert policy.shape == (batch, num_outputs)
    assert value.shape == (batch, 1)

    # Precision-matched reference (same bf16 dot inputs as the kernel): tight check.
    ref_policy, ref_value = reference_forward(x, params, match_kernel_precision=True)
    assert jnp.allclose(policy, ref_policy, atol=1e-2, rtol=1e-2), \
        float(jnp.max(jnp.abs(policy - ref_policy)))
    assert jnp.allclose(value, ref_value, atol=1e-2, rtol=1e-2), \
        float(jnp.max(jnp.abs(value - ref_value)))

    # Full-f32 reference: loose check that the module semantics are preserved.
    f32_policy, f32_value = reference_forward(x, params, match_kernel_precision=False)
    assert jnp.allclose(policy, f32_policy, atol=5e-2, rtol=5e-2)
    assert jnp.allclose(value, f32_value, atol=5e-2, rtol=5e-2)

    print("KERNEL_OK")
</pallas_src>

<mosaic_0001>
module attributes {stable_mosaic.version = 11 : i64} {
  func.func @kernel(%arg0: memref<8x4xf32, #tpu.memory_space<vmem>>, %arg1: memref<4x256xf32, #tpu.memory_space<vmem>>, %arg2: memref<1x256xf32, #tpu.memory_space<vmem>>, %arg3: memref<128x128xbf16, #tpu.memory_space<any>>, %arg4: memref<1x128xf32, #tpu.memory_space<vmem>>, %arg5: memref<128x128xbf16, #tpu.memory_space<any>>, %arg6: memref<1x128xf32, #tpu.memory_space<vmem>>, %arg7: memref<256x128xbf16, #tpu.memory_space<any>>, %arg8: memref<1x128xf32, #tpu.memory_space<vmem>>, %arg9: memref<8x128xf32, #tpu.memory_space<vmem>>, %arg10: memref<128x128xbf16, #tpu.memory_space<vmem>>, %arg11: memref<128x128xbf16, #tpu.memory_space<vmem>>, %arg12: memref<256x128xbf16, #tpu.memory_space<vmem>>, %arg13: memref<3x!tpu.dma_semaphore, #tpu.memory_space<semaphore_mem>>) attributes {dimension_semantics = [], scalar_prefetch = 0 : i64, scratch_operands = 4 : i64, tpu.core_type = #tpu.core_type<tc>} {
    %c0_i32 = arith.constant 0 : i32
    %0 = tpu.memref_slice %arg13[%c0_i32] : memref<3x!tpu.dma_semaphore, #tpu.memory_space<semaphore_mem>> -> memref<1x!tpu.dma_semaphore, #tpu.memory_space<semaphore_mem>>
    %1 = tpu.memref_squeeze %0 : memref<1x!tpu.dma_semaphore, #tpu.memory_space<semaphore_mem>> -> memref<!tpu.dma_semaphore, #tpu.memory_space<semaphore_mem>>
    tpu.enqueue_dma source(%arg3 : memref<128x128xbf16, #tpu.memory_space<any>>) target(%arg10 : memref<128x128xbf16, #tpu.memory_space<vmem>>) target_semaphore(%1 : memref<!tpu.dma_semaphore, #tpu.memory_space<semaphore_mem>>)
    %c1_i32 = arith.constant 1 : i32
    %2 = tpu.memref_slice %arg13[%c1_i32] : memref<3x!tpu.dma_semaphore, #tpu.memory_space<semaphore_mem>> -> memref<1x!tpu.dma_semaphore, #tpu.memory_space<semaphore_mem>>
    %3 = tpu.memref_squeeze %2 : memref<1x!tpu.dma_semaphore, #tpu.memory_space<semaphore_mem>> -> memref<!tpu.dma_semaphore, #tpu.memory_space<semaphore_mem>>
    tpu.enqueue_dma source(%arg5 : memref<128x128xbf16, #tpu.memory_space<any>>) target(%arg11 : memref<128x128xbf16, #tpu.memory_space<vmem>>) target_semaphore(%3 : memref<!tpu.dma_semaphore, #tpu.memory_space<semaphore_mem>>)
    %c2_i32 = arith.constant 2 : i32
    %4 = tpu.memref_slice %arg13[%c2_i32] : memref<3x!tpu.dma_semaphore, #tpu.memory_space<semaphore_mem>> -> memref<1x!tpu.dma_semaphore, #tpu.memory_space<semaphore_mem>>
    %5 = tpu.memref_squeeze %4 : memref<1x!tpu.dma_semaphore, #tpu.memory_space<semaphore_mem>> -> memref<!tpu.dma_semaphore, #tpu.memory_space<semaphore_mem>>
    tpu.enqueue_dma source(%arg7 : memref<256x128xbf16, #tpu.memory_space<any>>) target(%arg12 : memref<256x128xbf16, #tpu.memory_space<vmem>>) target_semaphore(%5 : memref<!tpu.dma_semaphore, #tpu.memory_space<semaphore_mem>>)
    %c0 = arith.constant 0 : index
    %c0_0 = arith.constant 0 : index
    %6 = vector.load %arg0[%c0, %c0_0] : memref<8x4xf32, #tpu.memory_space<vmem>>, vector<8x4xf32>
    %c0_1 = arith.constant 0 : index
    %c0_2 = arith.constant 0 : index
    %7 = vector.load %arg1[%c0_1, %c0_2] : memref<4x256xf32, #tpu.memory_space<vmem>>, vector<4x256xf32>
    %c0_3 = arith.constant 0 : index
    %c0_4 = arith.constant 0 : index
    %8 = vector.load %arg2[%c0_3, %c0_4] : memref<1x256xf32, #tpu.memory_space<vmem>>, vector<1x256xf32>
    %9 = vector.shape_cast %8 : vector<1x256xf32> to vector<1x256xf32>
    %10 = vector.broadcast %9 : vector<1x256xf32> to vector<8x256xf32>
    %11 = vector.extract_strided_slice %6 {offsets = [0, 0], sizes = [8, 1], strides = [1, 1]} : vector<8x4xf32> to vector<8x1xf32>
    %12 = vector.extract_strided_slice %7 {offsets = [0, 0], sizes = [1, 256], strides = [1, 1]} : vector<4x256xf32> to vector<1x256xf32>
    %13 = vector.broadcast %11 : vector<8x1xf32> to vector<8x256xf32>
    %14 = vector.broadcast %12 : vector<1x256xf32> to vector<8x256xf32>
    %15 = arith.mulf %13, %14 : vector<8x256xf32>
    %16 = arith.addf %10, %15 : vector<8x256xf32>
    %17 = vector.extract_strided_slice %6 {offsets = [0, 1], sizes = [8, 1], strides = [1, 1]} : vector<8x4xf32> to vector<8x1xf32>
    %18 = vector.extract_strided_slice %7 {offsets = [1, 0], sizes = [1, 256], strides = [1, 1]} : vector<4x256xf32> to vector<1x256xf32>
    %19 = vector.broadcast %17 : vector<8x1xf32> to vector<8x256xf32>
    %20 = vector.broadcast %18 : vector<1x256xf32> to vector<8x256xf32>
    %21 = arith.mulf %19, %20 : vector<8x256xf32>
    %22 = arith.addf %16, %21 : vector<8x256xf32>
    %23 = vector.extract_strided_slice %6 {offsets = [0, 2], sizes = [8, 1], strides = [1, 1]} : vector<8x4xf32> to vector<8x1xf32>
    %24 = vector.extract_strided_slice %7 {offsets = [2, 0], sizes = [1, 256], strides = [1, 1]} : vector<4x256xf32> to vector<1x256xf32>
    %25 = vector.broadcast %23 : vector<8x1xf32> to vector<8x256xf32>
    %26 = vector.broadcast %24 : vector<1x256xf32> to vector<8x256xf32>
    %27 = arith.mulf %25, %26 : vector<8x256xf32>
    %28 = arith.addf %22, %27 : vector<8x256xf32>
    %29 = vector.extract_strided_slice %6 {offsets = [0, 3], sizes = [8, 1], strides = [1, 1]} : vector<8x4xf32> to vector<8x1xf32>
    %30 = vector.extract_strided_slice %7 {offsets = [3, 0], sizes = [1, 256], strides = [1, 1]} : vector<4x256xf32> to vector<1x256xf32>
    %31 = vector.broadcast %29 : vector<8x1xf32> to vector<8x256xf32>
    %32 = vector.broadcast %30 : vector<1x256xf32> to vector<8x256xf32>
    %33 = arith.mulf %31, %32 : vector<8x256xf32>
    %34 = arith.addf %28, %33 : vector<8x256xf32>
    %35 = vector.extract_strided_slice %34 {offsets = [0, 0], sizes = [8, 128], strides = [1, 1]} : vector<8x256xf32> to vector<8x128xf32>
    %36 = vector.extract_strided_slice %34 {offsets = [0, 128], sizes = [8, 128], strides = [1, 1]} : vector<8x256xf32> to vector<8x128xf32>
    %37 = math.tanh %35 : vector<8x128xf32>
    %38 = arith.mulf %37, %37 : vector<8x128xf32>
    %39 = arith.mulf %36, %36 : vector<8x128xf32>
    %cst = arith.constant 0.000000e+00 : f32
    %40 = vector.broadcast %cst : f32 to vector<8x128xf32>
    %41 = arith.subf %40, %39 : vector<8x128xf32>
    %42 = math.exp %41 : vector<8x128xf32>
    %c0_i32_5 = arith.constant 0 : i32
    %43 = tpu.memref_slice %arg13[%c0_i32_5] : memref<3x!tpu.dma_semaphore, #tpu.memory_space<semaphore_mem>> -> memref<1x!tpu.dma_semaphore, #tpu.memory_space<semaphore_mem>>
    %44 = tpu.memref_squeeze %43 : memref<1x!tpu.dma_semaphore, #tpu.memory_space<semaphore_mem>> -> memref<!tpu.dma_semaphore, #tpu.memory_space<semaphore_mem>>
    tpu.wait_dma2 semaphore(%44 : memref<!tpu.dma_semaphore, #tpu.memory_space<semaphore_mem>>) src(%arg3 : memref<128x128xbf16, #tpu.memory_space<any>>) dst(%arg10 : memref<128x128xbf16, #tpu.memory_space<vmem>>)
    %45 = arith.truncf %38 : vector<8x128xf32> to vector<8x128xbf16>
    %c0_6 = arith.constant 0 : index
    %c0_7 = arith.constant 0 : index
    %46 = vector.load %arg10[%c0_6, %c0_7] : memref<128x128xbf16, #tpu.memory_space<vmem>>, vector<128x128xbf16>
    %cst_8 = arith.constant dense<0.000000e+00> : vector<8x128xf32>
    %47 = tpu.matmul %45, %46, %cst_8 {dimension_numbers = #tpu.dot_dimension_numbers<[1], [0], [0], [1], [0, 0, 1, 1], [], []>} : vector<8x128xbf16>, vector<128x128xbf16>, vector<8x128xf32> -> vector<8x128xf32>
    %c0_9 = arith.constant 0 : index
    %c0_10 = arith.constant 0 : index
    %48 = vector.load %arg4[%c0_9, %c0_10] : memref<1x128xf32, #tpu.memory_space<vmem>>, vector<1x128xf32>
    %49 = vector.broadcast %48 : vector<1x128xf32> to vector<8x128xf32>
    %50 = arith.addf %47, %49 : vector<8x128xf32>
    %cst_11 = arith.constant 0.000000e+00 : f32
    %51 = vector.broadcast %cst_11 : f32 to vector<8x128xf32>
    %52 = arith.maximumf %50, %51 : vector<8x128xf32>
    %c1_i32_12 = arith.constant 1 : i32
    %53 = tpu.memref_slice %arg13[%c1_i32_12] : memref<3x!tpu.dma_semaphore, #tpu.memory_space<semaphore_mem>> -> memref<1x!tpu.dma_semaphore, #tpu.memory_space<semaphore_mem>>
    %54 = tpu.memref_squeeze %53 : memref<1x!tpu.dma_semaphore, #tpu.memory_space<semaphore_mem>> -> memref<!tpu.dma_semaphore, #tpu.memory_space<semaphore_mem>>
    tpu.wait_dma2 semaphore(%54 : memref<!tpu.dma_semaphore, #tpu.memory_space<semaphore_mem>>) src(%arg5 : memref<128x128xbf16, #tpu.memory_space<any>>) dst(%arg11 : memref<128x128xbf16, #tpu.memory_space<vmem>>)
    %55 = arith.truncf %42 : vector<8x128xf32> to vector<8x128xbf16>
    %c0_13 = arith.constant 0 : index
    %c0_14 = arith.constant 0 : index
    %56 = vector.load %arg11[%c0_13, %c0_14] : memref<128x128xbf16, #tpu.memory_space<vmem>>, vector<128x128xbf16>
    %cst_15 = arith.constant dense<0.000000e+00> : vector<8x128xf32>
    %57 = tpu.matmul %55, %56, %cst_15 {dimension_numbers = #tpu.dot_dimension_numbers<[1], [0], [0], [1], [0, 0, 1, 1], [], []>} : vector<8x128xbf16>, vector<128x128xbf16>, vector<8x128xf32> -> vector<8x128xf32>
    %c0_16 = arith.constant 0 : index
    %c0_17 = arith.constant 0 : index
    %58 = vector.load %arg6[%c0_16, %c0_17] : memref<1x128xf32, #tpu.memory_space<vmem>>, vector<1x128xf32>
    %59 = vector.broadcast %58 : vector<1x128xf32> to vector<8x128xf32>
    %60 = arith.addf %57, %59 : vector<8x128xf32>
    %61 = arith.mulf %60, %60 : vector<8x128xf32>
    %cst_18 = arith.constant 0.000000e+00 : f32
    %62 = vector.broadcast %cst_18 : f32 to vector<8x128xf32>
    %63 = arith.subf %62, %61 : vector<8x128xf32>
    %64 = math.exp %63 : vector<8x128xf32>
    %c2_i32_19 = arith.constant 2 : i32
    %65 = tpu.memref_slice %arg13[%c2_i32_19] : memref<3x!tpu.dma_semaphore, #tpu.memory_space<semaphore_mem>> -> memref<1x!tpu.dma_semaphore, #tpu.memory_space<semaphore_mem>>
    %66 = tpu.memref_squeeze %65 : memref<1x!tpu.dma_semaphore, #tpu.memory_space<semaphore_mem>> -> memref<!tpu.dma_semaphore, #tpu.memory_space<semaphore_mem>>
    tpu.wait_dma2 semaphore(%66 : memref<!tpu.dma_semaphore, #tpu.memory_space<semaphore_mem>>) src(%arg7 : memref<256x128xbf16, #tpu.memory_space<any>>) dst(%arg12 : memref<256x128xbf16, #tpu.memory_space<vmem>>)
    %67 = arith.truncf %52 : vector<8x128xf32> to vector<8x128xbf16>
    %c0_20 = arith.constant 0 : index
    %c0_21 = arith.constant 0 : index
    %68 = vector.load %arg12[%c0_20, %c0_21] : memref<256x128xbf16, #tpu.memory_space<vmem>>, vector<128x128xbf16>
    %cst_22 = arith.constant dense<0.000000e+00> : vector<8x128xf32>
    %69 = tpu.matmul %67, %68, %cst_22 {dimension_numbers = #tpu.dot_dimension_numbers<[1], [0], [0], [1], [0, 0, 1, 1], [], []>} : vector<8x128xbf16>, vector<128x128xbf16>, vector<8x128xf32> -> vector<8x128xf32>
    %70 = arith.truncf %64 : vector<8x128xf32> to vector<8x128xbf16>
    %c128 = arith.constant 128 : index
    %c0_23 = arith.constant 0 : index
    %71 = vector.load %arg12[%c128, %c0_23] : memref<256x128xbf16, #tpu.memory_space<vmem>>, vector<128x128xbf16>
    %cst_24 = arith.constant dense<0.000000e+00> : vector<8x128xf32>
    %72 = tpu.matmul %70, %71, %cst_24 {dimension_numbers = #tpu.dot_dimension_numbers<[1], [0], [0], [1], [0, 0, 1, 1], [], []>} : vector<8x128xbf16>, vector<128x128xbf16>, vector<8x128xf32> -> vector<8x128xf32>
    %73 = arith.addf %69, %72 : vector<8x128xf32>
    %c0_25 = arith.constant 0 : index
    %c0_26 = arith.constant 0 : index
    %74 = vector.load %arg8[%c0_25, %c0_26] : memref<1x128xf32, #tpu.memory_space<vmem>>, vector<1x128xf32>
    %75 = vector.broadcast %74 : vector<1x128xf32> to vector<8x128xf32>
    %76 = arith.addf %73, %75 : vector<8x128xf32>
    %77 = tpu.iota {dimensions = array<i32: 1>} : vector<8x128xi32>
    %c1_i32_27 = arith.constant 1 : i32
    %78 = vector.broadcast %c1_i32_27 : i32 to vector<8x128xi32>
    %79 = arith.cmpi sge, %77, %78 : vector<8x128xi32>
    %80 = math.tanh %76 : vector<8x128xf32>
    %81 = arith.select %79, %80, %76 : vector<8x128xi1>, vector<8x128xf32>
    %c0_28 = arith.constant 0 : index
    %c0_29 = arith.constant 0 : index
    %82 = vector.load %arg9[%c0_28, %c0_29] : memref<8x128xf32, #tpu.memory_space<vmem>>, vector<8x128xf32>
    tpu.vector_store %arg9[%c0_28, %c0_29], %81 {strides = array<i32>} : memref<8x128xf32, #tpu.memory_space<vmem>>, vector<8x128xf32>,
    return
  }
}

</mosaic_0001>

<bundles_post_ra>
// kernel: actor_critic_forward.1
= control target key start
LH: loop header
LB: loop body
LE: loop exit
PB: predicated region body
PF: predicated region fallthrough
CT: control target
= control target key end

     0   :  { %v667_v0 = vmov 0   ;;  %v668_v2 = vmov 2   ;;  %v669_v3 = vmov 1   ;;  %v670_v4 = vmov 3   ;;  %s671_s11 = smov [#allocation2]   ;;  %s672_s13 = smov [#allocation3]   ;;  %s835_s0 = inlined_call_operand.vmem [shape: f32[8,4], index: 0, kind: input, shape index: {}]   ;;  %s836_s3 = inlined_call_operand.hbm [shape: bf16[128,128], index: 3, kind: input, shape index: {}]   ;;  %s837_s5 = inlined_call_operand.hbm [shape: bf16[128,128], index: 5, kind: input, shape index: {}]   ;;  %s838_s4 = inlined_call_operand.vmem [shape: f32[1,128], index: 4, kind: input, shape index: {}]   ;;  %s839_s6 = inlined_call_operand.vmem [shape: f32[1,128], index: 6, kind: input, shape index: {}]   ;;  %s840_s8 = inlined_call_operand.vmem [shape: f32[1,128], index: 8, kind: input, shape index: {}]   ;;  %s841_s9 = inlined_call_operand.vmem [shape: f32[8,128], index: 9, kind: output, shape index: {}]   ;;  %s842_s7 = inlined_call_operand.hbm [shape: bf16[256,128], index: 7, kind: input, shape index: {}]   ;;  %s843_s1 = inlined_call_operand.vmem [shape: f32[4,256], index: 1, kind: input, shape index: {}]   ;;  %s844_s2 = inlined_call_operand.vmem [shape: f32[1,256], index: 2, kind: input, shape index: {}]  }
   0x1   :  { %582 = vset.pattern.permute.xlu0 %v667_v0  ;;  %v62_v1 = vld [vmem:[%s835_s0] sm:$0xff]  ;;  %584 = vset.pattern.permute.xlu1 %v668_v2  ;;  %s34_s12 = sshll.u32 %s671_s11, 4  ;;  %s46_s14 = sshll.u32 %s672_s13, 4  ;;  %s35_s12 = int_to_ptr.vmem [resolvable:$true] %s34_s12  ;;  %s47_s14 = int_to_ptr.vmem [resolvable:$true] %s46_s14 }
   0x2   :  { %78 = vperm.xlu0 %582, %v62_v1   ;;  %131 = vperm.xlu1 %584, %v62_v1   ;;  %s595_s0 = scalar_lea.hbm %s836_s3, 1024 }
   0x3   :  { %p596_p0 = scmp.ne.s32.totalorder %s836_s3, %s595_s0  ;;  %p599_p1 = scmp.lt.u32.totalorder %s595_s0, %s836_s3 }
   0x5   :  { %p601_p2 = pnand %p599_p1, %p596_p0 }
   0x6   :  { %583 = vset.pattern.permute.xlu0 %v669_v3  ;;  %585 = vset.pattern.permute.xlu1 %v670_v4 }
   0x7   :  { %105 = vperm.xlu0 %583, %v62_v1   ;;  %157 = vperm.xlu1 %585, %v62_v1  }
   0xb   :  { %586 = vset.pattern.permute.xlu0 %v670_v4 }
   0xc   :  { %604 = shalt.err (!%p601_p2)  }
   0xd   :  { %s605_s21 = scalar_lea.vmem %s35_s12, 1024  ;;  %p610_p4 = scmp.lt.s32.totalorder %s35_s12, %s35_s12 }
   0xe   :  { %p606_p3 = scmp.ne.s32.totalorder %s35_s12, %s605_s21  ;;  %p611_p5 = scmp.lt.s32.totalorder %s605_s21, %s605_s21 }
  0x10   :  { %p612_p6 = por %p611_p5, %p610_p4 }
  0x12   :  { %p613_p7 = pnand %p612_p6, %p606_p3 }
  0x14   :  { %616 = shalt.err (!%p613_p7)  }
  0x15   :  { %37 = dma.hbm_to_vmem [thread:$0]  %s836_s3, 1024, %s35_s12, [#allocation5] }
  0x16   :  { %s617_s26 = scalar_lea.hbm %s837_s5, 1024 }
  0x17   :  { %p618_p8 = scmp.ne.s32.totalorder %s837_s5, %s617_s26  ;;  %p621_p9 = scmp.lt.u32.totalorder %s617_s26, %s837_s5 }
  0x19   :  { %p623_p10 = pnand %p621_p9, %p618_p8 }
  0x1b   :  { %626 = shalt.err (!%p623_p10)  }
  0x1c   :  { %s627_s10 = scalar_lea.vmem %s47_s14, 1024  ;;  %p632_p12 = scmp.lt.s32.totalorder %s47_s14, %s47_s14 }
  0x1d   :  { %p628_p11 = scmp.ne.s32.totalorder %s47_s14, %s627_s10  ;;  %p633_p13 = scmp.lt.s32.totalorder %s627_s10, %s627_s10 }
  0x1f   :  { %p634_p0 = por %p633_p13, %p632_p12 }
  0x21   :  { %p635_p1 = pnand %p634_p0, %p628_p11 }
  0x23   :  { %638 = shalt.err (!%p635_p1)  }
  0x24   :  { %49 = dma.hbm_to_vmem [thread:$0]  %s837_s5, 1024, %s47_s14, [#allocation5 + $0x1] }
  0x25   :  { %s673_s12 = smov [#allocation4]   ;;  %s639_s0 = scalar_lea.hbm %s842_s7, 2048 }
  0x26   :  { %s58_s13 = sshll.u32 %s673_s12, 4  ;;  %p640_p2 = scmp.ne.s32.totalorder %s842_s7, %s639_s0  ;;  %s59_s13 = int_to_ptr.vmem [resolvable:$true] %s58_s13 }
  0x27   :  { %p643_p3 = scmp.lt.u32.totalorder %s639_s0, %s842_s7 }
  0x29   :  { %p645_p4 = pnand %p643_p3, %p640_p2 }
  0x2b   :  { %648 = shalt.err (!%p645_p4)  }
  0x2c   :  { %s649_s21 = scalar_lea.vmem %s59_s13, 2048  ;;  %p654_p6 = scmp.lt.s32.totalorder %s59_s13, %s59_s13 }
  0x2d   :  { %p650_p5 = scmp.ne.s32.totalorder %s59_s13, %s649_s21  ;;  %p655_p7 = scmp.lt.s32.totalorder %s649_s21, %s649_s21 }
  0x2f   :  { %p656_p8 = por %p655_p7, %p654_p6 }
  0x31   :  { %p657_p9 = pnand %p656_p8, %p650_p5 }
  0x33   :  { %660 = shalt.err (!%p657_p9)  }
  0x34   :  { %61 = dma.hbm_to_vmem [thread:$0]  %s842_s7, 2048, %s59_s13, [#allocation5 + $0x2]  ;;  %v66_v5 = vlaneseq  ;;  %v63_v9 = vld [vmem:[%s843_s1] sm:$0xff] }
  0x35   :  { %v64_v18 = vld [vmem:[%s844_s2] sm:$0x3] }
  0x36   :  { %v67_v6 = vshrl.u32 %v66_v5, 7 }
  0x38   :  { %v68_v7 = vsub.s32 0, %v67_v6  ;;  %v88_v8 = vsub.s32 4, %v67_v6  ;;  %v72_v10 = vsub.s32 1, %v67_v6  ;;  %v114_v13 = vsub.s32 5, %v67_v6 }
  0x39   :  { %v136_v14 = vsub.s32 2, %v67_v6  ;;  %v140_v15 = vsub.s32 6, %v67_v6  ;;  %v162_v16 = vsub.s32 3, %v67_v6  ;;  %v166_v17 = vsub.s32 7, %v67_v6 }
  0x3a   :  { %v85_v11 = vrot.slane %v63_v9, %v68_v7  ;;  %v89_v12 = vrot.slane %v63_v9, %v88_v8  ;;  %v111_v21 = vrot.slane %v63_v9, %v72_v10  ;;  %v115_v22 = vrot.slane %v63_v9, %v114_v13 }
  0x3b   :  { %v137_v23 = vrot.slane %v63_v9, %v136_v14  ;;  %v141_v24 = vrot.slane %v63_v9, %v140_v15  ;;  %v163_v27 = vrot.slane %v63_v9, %v162_v16  ;;  %v167_v28 = vrot.slane %v63_v9, %v166_v17 }
  0x3c   :  { %v95_v19 = vrot.slane %v85_v11, %v68_v7  ;;  %v99_v20 = vrot.slane %v89_v12, %v68_v7  ;;  %v69_v29 = vrot.slane %v64_v18, %v68_v7  ;;  %v73_v30 = vrot.slane %v64_v18, %v72_v10 }
  0x3d   :  { %v121_v33 = vrot.slane %v111_v21, %v72_v10  ;;  %v125_v34 = vrot.slane %v115_v22, %v72_v10  ;;  %v147_v35 = vrot.slane %v137_v23, %v136_v14  ;;  %v151_v36 = vrot.slane %v141_v24, %v136_v14 }
  0x3e   :  { %v173_v37 = vrot.slane %v163_v27, %v162_v16  ;;  %v177_v38 = vrot.slane %v167_v28, %v162_v16 }
  0x81   :  { %v79_v25 = vpop.permute.xlu0 %78  ;;  %v132_v26 = vpop.permute.xlu1 %131 }
  0x82   :  { %v100_v31 = vmul.f32 %v95_v19, %v79_v25  ;;  %v101_v32 = vmul.f32 %v99_v20, %v79_v25  ;;  %v152_v45 = vmul.f32 %v147_v35, %v132_v26  ;;  %v153_v46 = vmul.f32 %v151_v36, %v132_v26 }
  0x84   :  { %v102_v41 = vadd.f32 %v100_v31, %v69_v29  ;;  %v103_v42 = vadd.f32 %v101_v32, %v73_v30 }
  0x86   :  { %v106_v39 = vpop.permute.xlu0 %105  ;;  %v158_v40 = vpop.permute.xlu1 %157 }
  0x87   :  { %v126_v43 = vmul.f32 %v121_v33, %v106_v39  ;;  %v127_v44 = vmul.f32 %v125_v34, %v106_v39  ;;  %v178_v49 = vmul.f32 %v173_v37, %v158_v40  ;;  %v179_v50 = vmul.f32 %v177_v38, %v158_v40 }
  0x89   :  { %v128_v47 = vadd.f32 %v126_v43, %v102_v41  ;;  %v129_v48 = vadd.f32 %v127_v44, %v103_v42 }
  0x8b   :  { %v154_v51 = vadd.f32 %v152_v45, %v128_v47  ;;  %v155_v52 = vadd.f32 %v153_v46, %v129_v48 }
  0x8d   :  { %v180_v53 = vadd.f32 %v178_v49, %v154_v51  ;;  %v181_v54 = vadd.f32 %v179_v50, %v155_v52 }
  0x8f   :  { %587 = vtanh.f32 %v180_v53  ;;  %v184_v55 = vmul.f32 %v181_v54, %v181_v54 }
  0x91   :  { %v185_v56 = vsub.f32 0.0, %v184_v55 }
  0x93   :  { %v186_v57 = vmul.f32 1.442695, %v185_v56 }
  0x95   :  { %589 = vpow2.f32 %v186_v57 }
  0x99   :  { %v588_v58 = vpop.eup %587 }
  0x9a   :  { %v183_v59 = vmul.f32 %v588_v58, %v588_v58 }
  0x9f   :  { %v772_v60 = vpop.eup %589 }
  0xa0   :  { %661 = dma.done.wait [#allocation5], 1024 }
  0xa1   :  { %662 = vsyncadd [#allocation5], 4294966272  ;;  %v674_v61 = vmov 0.0   ;;  %vm675_vm0 = vmmov 0   ;;  %v193_v62 = vld [vmem:[#allocation2] sm:$0xff]  ;;  %v194_v63 = vld [vmem:[#allocation2 + $0x8] sm:$0xff]  ;;  %v192_v7 = vpack.c.bf16 %v183_v59, %v183_v59 }
  0xa2   :  { %493 = vmatprep.subr.bf16.mxu0 %v674_v61  ;;  %509 = vmatprep.mubr.msk.bf16.mxu0 %vm675_vm0, %v674_v61  ;;  %v195_v0 = vld [vmem:[#allocation2 + $0x10] sm:$0xff]  ;;  %v196_v1 = vld [vmem:[#allocation2 + $0x18] sm:$0xff]  ;;  %v197_v2 = vld [vmem:[#allocation2 + $0x20] sm:$0xff] }
  0xa3   :  { %494 = vmatpush3.bf16.msra.mxu0 %v193_v62  ;;  %v198_v3 = vld [vmem:[#allocation2 + $0x28] sm:$0xff]  ;;  %v199_v4 = vld [vmem:[#allocation2 + $0x30] sm:$0xff]  ;;  %v200_v6 = vld [vmem:[#allocation2 + $0x38] sm:$0xff] }
  0xa4   :  { %495 = vmatprep.subr.bf16.mxu0 %v674_v61  ;;  %v451_v8 = vld [vmem:[%s838_s4] ss:$0 sm:$0xff] }
  0xa7   :  { %496 = vmatpush3.bf16.msra.mxu0 %v194_v63 }
  0xa8   :  { %497 = vmatprep.subr.bf16.mxu0 %v674_v61 }
  0xab   :  { %498 = vmatpush3.bf16.msra.mxu0 %v195_v0 }
  0xac   :  { %499 = vmatprep.subr.bf16.mxu0 %v674_v61 }
  0xaf   :  { %500 = vmatpush3.bf16.msra.mxu0 %v196_v1 }
  0xb0   :  { %501 = vmatprep.subr.bf16.mxu0 %v674_v61 }
  0xb3   :  { %502 = vmatpush3.bf16.msra.mxu0 %v197_v2 }
  0xb4   :  { %503 = vmatprep.subr.bf16.mxu0 %v674_v61 }
  0xb7   :  { %504 = vmatpush3.bf16.msra.mxu0 %v198_v3 }
  0xb8   :  { %505 = vmatprep.subr.bf16.mxu0 %v674_v61 }
  0xbb   :  { %506 = vmatpush3.bf16.msra.mxu0 %v199_v4 }
  0xbc   :  { %507 = vmatprep.subr.bf16.mxu0 %v674_v61 }
  0xbf   :  { %508 = vmatpush3.bf16.msra.mxu0 %v200_v6 }
  0xc2   :  { %510 = vmatmul.mubr.bf16.vlgmr.msra.gmra.mrb[0].mxu0 %v192_v7 }
 0x195   :  { %v242_v9 = vpop.f32.mrb[0].mxu0 }
 0x196   :  { %v787_v10 = vadd.f32 %v451_v8, %v242_v9  ;;  %v511_v11 = vpop.f32.mrb[1].mxu0 }
 0x197   :  { %v245_v12 = vpop.f32.mrb[2].mxu0 }
 0x198   :  { %v248_v13 = vmax.f32 %v787_v10, 0.0  ;;  %v512_v14 = vpop.f32.mrb[3].mxu0 }
 0x199   :  { %663 = dma.done.wait [#allocation5 + $0x1], 1024 }
 0x19a   :  { %664 = vsyncadd [#allocation5 + $0x1], 4294966272  ;;  %513 = vmatprep.subr.bf16.mxu1 %v674_v61  ;;  %529 = vmatprep.mubr.msk.bf16.mxu1 %vm675_vm0, %v674_v61  ;;  %v252_v15 = vld [vmem:[#allocation3] sm:$0xff]  ;;  %v253_v16 = vld [vmem:[#allocation3 + $0x8] sm:$0xff]  ;;  %v251_v23 = vpack.c.bf16 %v772_v60, %v772_v60 }
 0x19b   :  { %514 = vmatpush3.bf16.msra.mxu1 %v252_v15  ;;  %v254_v17 = vld [vmem:[#allocation3 + $0x10] sm:$0xff]  ;;  %v255_v18 = vld [vmem:[#allocation3 + $0x18] sm:$0xff]  ;;  %v256_v19 = vld [vmem:[#allocation3 + $0x20] sm:$0xff] }
 0x19c   :  { %515 = vmatprep.subr.bf16.mxu1 %v674_v61  ;;  %v257_v20 = vld [vmem:[#allocation3 + $0x28] sm:$0xff]  ;;  %v258_v21 = vld [vmem:[#allocation3 + $0x30] sm:$0xff]  ;;  %v259_v22 = vld [vmem:[#allocation3 + $0x38] sm:$0xff] }
 0x19d   :  { %v452_v24 = vld [vmem:[%s839_s6] ss:$0 sm:$0xff] }
 0x19f   :  { %516 = vmatpush3.bf16.msra.mxu1 %v253_v16 }
 0x1a0   :  { %517 = vmatprep.subr.bf16.mxu1 %v674_v61 }
 0x1a3   :  { %518 = vmatpush3.bf16.msra.mxu1 %v254_v17 }
 0x1a4   :  { %519 = vmatprep.subr.bf16.mxu1 %v674_v61 }
 0x1a7   :  { %520 = vmatpush3.bf16.msra.mxu1 %v255_v18 }
 0x1a8   :  { %521 = vmatprep.subr.bf16.mxu1 %v674_v61 }
 0x1ab   :  { %522 = vmatpush3.bf16.msra.mxu1 %v256_v19 }
 0x1ac   :  { %523 = vmatprep.subr.bf16.mxu1 %v674_v61 }
 0x1af   :  { %524 = vmatpush3.bf16.msra.mxu1 %v257_v20 }
 0x1b0   :  { %525 = vmatprep.subr.bf16.mxu1 %v674_v61 }
 0x1b3   :  { %526 = vmatpush3.bf16.msra.mxu1 %v258_v21 }
 0x1b4   :  { %527 = vmatprep.subr.bf16.mxu1 %v674_v61 }
 0x1b7   :  { %528 = vmatpush3.bf16.msra.mxu1 %v259_v22 }
 0x1ba   :  { %530 = vmatmul.mubr.bf16.vlgmr.msra.gmra.mrb[0].mxu1 %v251_v23 }
 0x28d   :  { %v301_v25 = vpop.f32.mrb[0].mxu1 }
 0x28e   :  { %v302_v26 = vadd.f32 %v452_v24, %v301_v25  ;;  %v531_v27 = vpop.f32.mrb[1].mxu1 }
 0x28f   :  { %v304_v28 = vpop.f32.mrb[2].mxu1 }
 0x290   :  { %v307_v29 = vmul.f32 %v302_v26, %v302_v26  ;;  %v532_v30 = vpop.f32.mrb[3].mxu1 }
 0x292   :  { %v308_v31 = vsub.f32 0.0, %v307_v29 }
 0x294   :  { %v309_v32 = vmul.f32 1.442695, %v308_v31 }
 0x296   :  { %591 = vpow2.f32 %v309_v32 }
 0x2a0   :  { %v592_v33 = vpop.eup %591 }
 0x2a1   :  { %665 = dma.done.wait [#allocation5 + $0x2], 2048 }
 0x2a2   :  { %666 = vsyncadd [#allocation5 + $0x2], 4294965248  ;;  %533 = vmatprep.subr.bf16.mxu0 %v674_v61  ;;  %553 = vmatprep.subr.bf16.mxu1 %v674_v61  ;;  %v325_v34 = vld [vmem:[#allocation4 + $0x40] sm:$0xff]  ;;  %v326_v36 = vld [vmem:[#allocation4 + $0x48] sm:$0xff]  ;;  %v324_v50 = vpack.c.bf16 %v592_v33, %v592_v33  ;;  %v315_v51 = vpack.c.bf16 %v248_v13, %v248_v13  ;;  %v422_v63 = vand.u32 127, %v66_v5 }
 0x2a3   :  { %549 = vmatprep.mubr.msk.bf16.mxu0 %vm675_vm0, %v674_v61  ;;  %569 = vmatprep.mubr.msk.bf16.mxu1 %vm675_vm0, %v674_v61  ;;  %v316_v35 = vld [vmem:[#allocation4] sm:$0xff]  ;;  %v317_v37 = vld [vmem:[#allocation4 + $0x8] sm:$0xff]  ;;  %v327_v38 = vld [vmem:[#allocation4 + $0x50] sm:$0xff] }
 0x2a4   :  { %534 = vmatpush3.bf16.msra.mxu0 %v325_v34  ;;  %554 = vmatpush3.bf16.msra.mxu1 %v316_v35  ;;  %v318_v39 = vld [vmem:[#allocation4 + $0x10] sm:$0xff]  ;;  %v328_v40 = vld [vmem:[#allocation4 + $0x58] sm:$0xff]  ;;  %v329_v42 = vld [vmem:[#allocation4 + $0x60] sm:$0xff]  ;;  %vm423_vm1 = vcmp.ge.s32.totalorder %v422_v63, 1 }
 0x2a5   :  { %535 = vmatprep.subr.bf16.mxu0 %v674_v61  ;;  %555 = vmatprep.subr.bf16.mxu1 %v674_v61  ;;  %v319_v41 = vld [vmem:[#allocation4 + $0x18] sm:$0xff]  ;;  %v320_v43 = vld [vmem:[#allocation4 + $0x20] sm:$0xff]  ;;  %v330_v44 = vld [vmem:[#allocation4 + $0x68] sm:$0xff] }
 0x2a6   :  { %v321_v45 = vld [vmem:[#allocation4 + $0x28] sm:$0xff]  ;;  %v331_v46 = vld [vmem:[#allocation4 + $0x70] sm:$0xff]  ;;  %v332_v48 = vld [vmem:[#allocation4 + $0x78] sm:$0xff] }
 0x2a7   :  { %v322_v47 = vld [vmem:[#allocation4 + $0x30] sm:$0xff]  ;;  %v323_v49 = vld [vmem:[#allocation4 + $0x38] sm:$0xff] }
 0x2a8   :  { %536 = vmatpush3.bf16.msra.mxu0 %v326_v36  ;;  %556 = vmatpush3.bf16.msra.mxu1 %v317_v37  ;;  %v453_v54 = vld [vmem:[%s840_s8] ss:$0 sm:$0xff] }
 0x2a9   :  { %537 = vmatprep.subr.bf16.mxu0 %v674_v61  ;;  %557 = vmatprep.subr.bf16.mxu1 %v674_v61 }
 0x2ac   :  { %538 = vmatpush3.bf16.msra.mxu0 %v327_v38  ;;  %558 = vmatpush3.bf16.msra.mxu1 %v318_v39 }
 0x2ad   :  { %539 = vmatprep.subr.bf16.mxu0 %v674_v61  ;;  %559 = vmatprep.subr.bf16.mxu1 %v674_v61 }
 0x2b0   :  { %540 = vmatpush3.bf16.msra.mxu0 %v328_v40  ;;  %560 = vmatpush3.bf16.msra.mxu1 %v319_v41 }
 0x2b1   :  { %541 = vmatprep.subr.bf16.mxu0 %v674_v61  ;;  %561 = vmatprep.subr.bf16.mxu1 %v674_v61 }
 0x2b4   :  { %542 = vmatpush3.bf16.msra.mxu0 %v329_v42  ;;  %562 = vmatpush3.bf16.msra.mxu1 %v320_v43 }
 0x2b5   :  { %543 = vmatprep.subr.bf16.mxu0 %v674_v61  ;;  %563 = vmatprep.subr.bf16.mxu1 %v674_v61 }
 0x2b8   :  { %544 = vmatpush3.bf16.msra.mxu0 %v330_v44  ;;  %564 = vmatpush3.bf16.msra.mxu1 %v321_v45 }
 0x2b9   :  { %545 = vmatprep.subr.bf16.mxu0 %v674_v61  ;;  %565 = vmatprep.subr.bf16.mxu1 %v674_v61 }
 0x2bc   :  { %546 = vmatpush3.bf16.msra.mxu0 %v331_v46  ;;  %566 = vmatpush3.bf16.msra.mxu1 %v322_v47 }
 0x2bd   :  { %547 = vmatprep.subr.bf16.mxu0 %v674_v61  ;;  %567 = vmatprep.subr.bf16.mxu1 %v674_v61 }
 0x2c0   :  { %548 = vmatpush3.bf16.msra.mxu0 %v332_v48  ;;  %568 = vmatpush3.bf16.msra.mxu1 %v323_v49 }
 0x2c3   :  { %550 = vmatmul.mubr.bf16.vlgmr.msra.gmra.mrb[4].mxu0 %v324_v50  ;;  %570 = vmatmul.mubr.bf16.vlgmr.msra.gmra.mrb[4].mxu1 %v315_v51 }
 0x396   :  { %v367_v52 = vpop.f32.mrb[4].mxu0  ;;  %v407_v53 = vpop.f32.mrb[4].mxu1 }
 0x397   :  { %v408_v55 = vadd.f32 %v407_v53, %v367_v52  ;;  %v551_v56 = vpop.f32.mrb[5].mxu0  ;;  %v571_v57 = vpop.f32.mrb[5].mxu1 }
 0x398   :  { %v370_v58 = vpop.f32.mrb[6].mxu0  ;;  %v410_v59 = vpop.f32.mrb[6].mxu1 }
 0x399   :  { %v420_v60 = vadd.f32 %v453_v54, %v408_v55  ;;  %v552_v61 = vpop.f32.mrb[7].mxu0  ;;  %v572_v62 = vpop.f32.mrb[7].mxu1 }
 0x39b   :  { %593 = vtanh.f32 %v420_v60 }
 0x3a5   :  { %v594_v0 = vpop.eup %593 }
 0x3a6   :  { %v425_v1 = vsel %vm423_vm1, %v594_v0, %v420_v60 }
 0x3a7   :  { %426 = vst [vmem:[%s841_s9] sm:$0xff] %v425_v1 }
 0x3a8   :  { %431 = vsyncmov [#allocation5] }
 0x3ab   :  { %s432_s8 = vpop.sfrf %431 }
 0x3ac   :  { %p454_p10 = scmp.ne.s32.totalorder %s432_s8, 0 }
 0x3ae   :  { %436 = shalt.err (%p454_p10)  }
 0x3af   :  { %438 = vsyncmov [#allocation5 + $0x1] }
 0x3b2   :  { %s439_s29 = vpop.sfrf %438 }
 0x3b3   :  { %p455_p11 = scmp.ne.s32.totalorder %s439_s29, 0 }
 0x3b5   :  { %443 = shalt.err (%p455_p11)  }
 0x3b6   :  { %445 = vsyncmov [#allocation5 + $0x2] }
 0x3b9   :  { %s446_s30 = vpop.sfrf %445 }
 0x3ba   :  { %p456_p12 = scmp.ne.s32.totalorder %s446_s30, 0 }
 0x3bc   :  { %450 = shalt.err (%p456_p12)  }

</bundles_post_ra>
